<compile_context>
chip_gen: v6e
topology: v6e:2x2x1
jax: 0.10.0
libtpu: 0.0.40
codegen_flags: <defaults>
</compile_context>

<pallas_src>
import jax
import jax.numpy as jnp
from jax.experimental import pallas as pl
from jax.experimental.pallas import tpu as pltpu


def channel_gate_kernel(x_ref, w1t_ref, w2_ref, o_ref):
    """One batch element per grid step.

    x_ref  : (1, C, HW)  one image, spatial flattened onto the lane axis
    w1t_ref: (C, R)      first Linear weight, transposed (W1 is (R, C))
    w2_ref : (C, R)      second Linear weight (W2 is (C, R))
    o_ref  : (1, C, HW)  gated output
    """
    x2 = x_ref[0].astype(jnp.float32)                    # (C, HW)
    hw = x2.shape[1]
    R = w1t_ref.shape[1]

    # Global average & max pool over the spatial (lane) axis -> (C, 1) each.
    avg = jnp.sum(x2, axis=1, keepdims=True) * (1.0 / hw)
    mx = jnp.max(x2, axis=1, keepdims=True)
    pooled = jnp.concatenate([avg, mx], axis=1)          # (C, 2) = [avg | max]

    # ---- shared MLP on the VPU (MXU pointless at K=C, M=R, N=2) ----
    w1t = w1t_ref[...].astype(jnp.float32)               # (C, R)
    w2 = w2_ref[...].astype(jnp.float32)                 # (C, R)

    # hidden[r, p] = relu( sum_c W1[r, c] * pooled[c, p] )   (R unrolled, R=4)
    h_rows = []
    for r in range(R):
        h_r = jnp.sum(w1t[:, r:r + 1] * pooled, axis=0, keepdims=True)  # (1, 2)
        h_rows.append(h_r)
    hidden = jnp.maximum(jnp.concatenate(h_rows, axis=0), 0.0)          # (R, 2)

    # att[c, p] = sum_r W2[c, r] * hidden[r, p]   -> R VPU FMAs on (C, 2)
    att = w2[:, 0:1] * hidden[0:1, :]
    for r in range(1, R):
        att = att + w2[:, r:r + 1] * hidden[r:r + 1, :]                 # (C, 2)

    # channel_att_sum = mlp(avg) + mlp(max); scale = sigmoid(channel_att_sum)
    att_sum = att[:, 0:1] + att[:, 1:2]                                 # (C, 1)
    scale = 1.0 / (1.0 + jnp.exp(-att_sum))                             # sigmoid

    # Gate: broadcast the per-channel scale across the lane-dense spatial axis.
    o_ref[0] = (x2 * scale).astype(o_ref.dtype)


def channel_gate_plus(x_nchw, w1, w2):
    """x_nchw: (N, C, H, W); w1: (R, C) first Linear weight; w2: (C, R) second."""
    N, C, H, W = x_nchw.shape
    R = w1.shape[0]
    HW = H * W  # must stay a multiple of 128 for the lane-dense layout used here

    x3 = x_nchw.reshape(N, C, HW)                 # free contiguous reshape
    w1t = jnp.transpose(w1, (1, 0))               # (C, R), tiny

    out3 = pl.pallas_call(
        channel_gate_kernel,
        out_shape=jax.ShapeDtypeStruct((N, C, HW), x_nchw.dtype),
        grid=(N,),
        in_specs=[
            pl.BlockSpec((1, C, HW), lambda n: (n, 0, 0)),
            pl.BlockSpec((C, R), lambda n: (0, 0)),
            pl.BlockSpec((C, R), lambda n: (0, 0)),
        ],
        out_specs=pl.BlockSpec((1, C, HW), lambda n: (n, 0, 0)),
        compiler_params=pltpu.CompilerParams(dimension_semantics=("parallel",)),
    )(x3, w1t, w2)

    return out3.reshape(N, C, H, W)


def _reference(x, w1, w2):
    """Pure-JAX reference matching the PyTorch forward."""
    avg = jnp.mean(x, axis=(2, 3))                        # (N, C)
    mx = jnp.max(x, axis=(2, 3))                          # (N, C)

    def mlp(v):
        h = jnp.maximum(v @ w1.T, 0.0)
        return h @ w2.T

    att = mlp(avg) + mlp(mx)                              # (N, C)
    scale = jax.nn.sigmoid(att)
    return x * scale[:, :, None, None]


if __name__ == "__main__":
    N, C, H, W = 2, 64, 16, 16
    reduction_ratio = 32
    R = max(C // reduction_ratio, 4)                      # = 4

    key = jax.random.PRNGKey(0)
    k0, k1, k2 = jax.random.split(key, 3)
    x = jax.random.normal(k0, (N, C, H, W), jnp.float32)
    w1 = 0.2 * jax.random.normal(k1, (R, C), jnp.float32)  # Linear(C -> R), bias-free
    w2 = 0.2 * jax.random.normal(k2, (C, R), jnp.float32)  # Linear(R -> C), bias-free

    out = channel_gate_plus(x, w1, w2)
    out = jax.block_until_ready(out)

    ref = _reference(x, w1, w2)
    assert out.shape == (N, C, H, W)
    assert jnp.allclose(out, ref, atol=1e-4, rtol=1e-4), "mismatch vs reference"

    print("KERNEL_OK")
</pallas_src>

<mosaic_0001>
module attributes {stable_mosaic.version = 11 : i64} {
  func.func @channel_gate_kernel(%arg0: i32, %arg1: memref<1x64x256xf32, #tpu.memory_space<vmem>>, %arg2: memref<64x4xf32, #tpu.memory_space<vmem>>, %arg3: memref<64x4xf32, #tpu.memory_space<vmem>>, %arg4: memref<1x64x256xf32, #tpu.memory_space<vmem>>) attributes {dimension_semantics = [#tpu.dimension_semantics<parallel>], iteration_bounds = array<i64: 2>, scalar_prefetch = 0 : i64, scratch_operands = 0 : i64, tpu.core_type = #tpu.core_type<tc>, window_params = [{transform_indices = @transform_0, window_bounds = array<i64: 1, 64, 256>}, {pipeline_mode = #tpu.pipeline_mode<synchronous>, transform_indices = @transform_1, window_bounds = array<i64: 64, 4>}, {pipeline_mode = #tpu.pipeline_mode<synchronous>, transform_indices = @transform_2, window_bounds = array<i64: 64, 4>}, {transform_indices = @transform_3, window_bounds = array<i64: 1, 64, 256>}]} {
    %c0 = arith.constant 0 : index
    %c0_0 = arith.constant 0 : index
    %c0_1 = arith.constant 0 : index
    %0 = vector.load %arg1[%c0, %c0_0, %c0_1] : memref<1x64x256xf32, #tpu.memory_space<vmem>>, vector<1x64x256xf32>
    %1 = vector.shape_cast %0 : vector<1x64x256xf32> to vector<64x256xf32>
    %cst = arith.constant dense<0.000000e+00> : vector<64xf32>
    %2 = vector.multi_reduction <add>, %1, %cst [1] : vector<64x256xf32> to vector<64xf32>
    %3 = vector.shape_cast %2 : vector<64xf32> to vector<64x1xf32>
    %cst_2 = arith.constant 3.906250e-03 : f32
    %4 = vector.broadcast %cst_2 : f32 to vector<64x1xf32>
    %5 = arith.mulf %3, %4 : vector<64x1xf32>
    %cst_3 = arith.constant dense<0xFF800000> : vector<64xf32>
    %6 = vector.multi_reduction <maximumf>, %1, %cst_3 [1] : vector<64x256xf32> to vector<64xf32>
    %7 = vector.shape_cast %6 : vector<64xf32> to vector<64x1xf32>
    %8 = tpu.concatenate %5, %7 in 1 : vector<64x1xf32>, vector<64x1xf32> -> vector<64x2xf32>
    %c0_4 = arith.constant 0 : index
    %c0_5 = arith.constant 0 : index
    %9 = vector.load %arg2[%c0_4, %c0_5] : memref<64x4xf32, #tpu.memory_space<vmem>>, vector<64x4xf32>
    %c0_6 = arith.constant 0 : index
    %c0_7 = arith.constant 0 : index
    %10 = vector.load %arg3[%c0_6, %c0_7] : memref<64x4xf32, #tpu.memory_space<vmem>>, vector<64x4xf32>
    %11 = vector.extract_strided_slice %9 {offsets = [0, 0], sizes = [64, 1], strides = [1, 1]} : vector<64x4xf32> to vector<64x1xf32>
    %12 = vector.broadcast %11 : vector<64x1xf32> to vector<64x2xf32>
    %13 = arith.mulf %12, %8 : vector<64x2xf32>
    %cst_8 = arith.constant dense<0.000000e+00> : vector<2xf32>
    %14 = vector.multi_reduction <add>, %13, %cst_8 [0] : vector<64x2xf32> to vector<2xf32>
    %15 = vector.shape_cast %14 : vector<2xf32> to vector<1x2xf32>
    %16 = vector.extract_strided_slice %9 {offsets = [0, 1], sizes = [64, 1], strides = [1, 1]} : vector<64x4xf32> to vector<64x1xf32>
    %17 = vector.broadcast %16 : vector<64x1xf32> to vector<64x2xf32>
    %18 = arith.mulf %17, %8 : vector<64x2xf32>
    %cst_9 = arith.constant dense<0.000000e+00> : vector<2xf32>
    %19 = vector.multi_reduction <add>, %18, %cst_9 [0] : vector<64x2xf32> to vector<2xf32>
    %20 = vector.shape_cast %19 : vector<2xf32> to vector<1x2xf32>
    %21 = vector.extract_strided_slice %9 {offsets = [0, 2], sizes = [64, 1], strides = [1, 1]} : vector<64x4xf32> to vector<64x1xf32>
    %22 = vector.broadcast %21 : vector<64x1xf32> to vector<64x2xf32>
    %23 = arith.mulf %22, %8 : vector<64x2xf32>
    %cst_10 = arith.constant dense<0.000000e+00> : vector<2xf32>
    %24 = vector.multi_reduction <add>, %23, %cst_10 [0] : vector<64x2xf32> to vector<2xf32>
    %25 = vector.shape_cast %24 : vector<2xf32> to vector<1x2xf32>
    %26 = vector.extract_strided_slice %9 {offsets = [0, 3], sizes = [64, 1], strides = [1, 1]} : vector<64x4xf32> to vector<64x1xf32>
    %27 = vector.broadcast %26 : vector<64x1xf32> to vector<64x2xf32>
    %28 = arith.mulf %27, %8 : vector<64x2xf32>
    %cst_11 = arith.constant dense<0.000000e+00> : vector<2xf32>
    %29 = vector.multi_reduction <add>, %28, %cst_11 [0] : vector<64x2xf32> to vector<2xf32>
    %30 = vector.shape_cast %29 : vector<2xf32> to vector<1x2xf32>
    %31 = tpu.concatenate %15, %20, %25, %30 in 0 : vector<1x2xf32>, vector<1x2xf32>, vector<1x2xf32>, vector<1x2xf32> -> vector<4x2xf32>
    %cst_12 = arith.constant 0.000000e+00 : f32
    %32 = vector.broadcast %cst_12 : f32 to vector<4x2xf32>
    %33 = arith.maximumf %31, %32 : vector<4x2xf32>
    %34 = vector.extract_strided_slice %10 {offsets = [0, 0], sizes = [64, 1], strides = [1, 1]} : vector<64x4xf32> to vector<64x1xf32>
    %35 = vector.extract_strided_slice %33 {offsets = [0, 0], sizes = [1, 2], strides = [1, 1]} : vector<4x2xf32> to vector<1x2xf32>
    %36 = vector.broadcast %34 : vector<64x1xf32> to vector<64x2xf32>
    %37 = vector.broadcast %35 : vector<1x2xf32> to vector<64x2xf32>
    %38 = arith.mulf %36, %37 : vector<64x2xf32>
    %39 = vector.extract_strided_slice %10 {offsets = [0, 1], sizes = [64, 1], strides = [1, 1]} : vector<64x4xf32> to vector<64x1xf32>
    %40 = vector.extract_strided_slice %33 {offsets = [1, 0], sizes = [1, 2], strides = [1, 1]} : vector<4x2xf32> to vector<1x2xf32>
    %41 = vector.broadcast %39 : vector<64x1xf32> to vector<64x2xf32>
    %42 = vector.broadcast %40 : vector<1x2xf32> to vector<64x2xf32>
    %43 = arith.mulf %41, %42 : vector<64x2xf32>
    %44 = arith.addf %38, %43 : vector<64x2xf32>
    %45 = vector.extract_strided_slice %10 {offsets = [0, 2], sizes = [64, 1], strides = [1, 1]} : vector<64x4xf32> to vector<64x1xf32>
    %46 = vector.extract_strided_slice %33 {offsets = [2, 0], sizes = [1, 2], strides = [1, 1]} : vector<4x2xf32> to vector<1x2xf32>
    %47 = vector.broadcast %45 : vector<64x1xf32> to vector<64x2xf32>
    %48 = vector.broadcast %46 : vector<1x2xf32> to vector<64x2xf32>
    %49 = arith.mulf %47, %48 : vector<64x2xf32>
    %50 = arith.addf %44, %49 : vector<64x2xf32>
    %51 = vector.extract_strided_slice %10 {offsets = [0, 3], sizes = [64, 1], strides = [1, 1]} : vector<64x4xf32> to vector<64x1xf32>
    %52 = vector.extract_strided_slice %33 {offsets = [3, 0], sizes = [1, 2], strides = [1, 1]} : vector<4x2xf32> to vector<1x2xf32>
    %53 = vector.broadcast %51 : vector<64x1xf32> to vector<64x2xf32>
    %54 = vector.broadcast %52 : vector<1x2xf32> to vector<64x2xf32>
    %55 = arith.mulf %53, %54 : vector<64x2xf32>
    %56 = arith.addf %50, %55 : vector<64x2xf32>
    %57 = vector.extract_strided_slice %56 {offsets = [0, 0], sizes = [64, 1], strides = [1, 1]} : vector<64x2xf32> to vector<64x1xf32>
    %58 = vector.extract_strided_slice %56 {offsets = [0, 1], sizes = [64, 1], strides = [1, 1]} : vector<64x2xf32> to vector<64x1xf32>
    %59 = arith.addf %57, %58 : vector<64x1xf32>
    %cst_13 = arith.constant 0.000000e+00 : f32
    %60 = vector.broadcast %cst_13 : f32 to vector<64x1xf32>
    %61 = arith.subf %60, %59 : vector<64x1xf32>
    %62 = math.exp %61 : vector<64x1xf32>
    %cst_14 = arith.constant 1.000000e+00 : f32
    %63 = vector.broadcast %cst_14 : f32 to vector<64x1xf32>
    %64 = arith.addf %63, %62 : vector<64x1xf32>
    %cst_15 = arith.constant 1.000000e+00 : f32
    %65 = vector.broadcast %cst_15 : f32 to vector<64x1xf32>
    %66 = arith.divf %65, %64 : vector<64x1xf32>
    %67 = vector.broadcast %66 : vector<64x1xf32> to vector<64x256xf32>
    %68 = arith.mulf %1, %67 : vector<64x256xf32>
    %c0_16 = arith.constant 0 : index
    %c0_17 = arith.constant 0 : index
    %c0_18 = arith.constant 0 : index
    %69 = vector.load %arg4[%c0_16, %c0_17, %c0_18] : memref<1x64x256xf32, #tpu.memory_space<vmem>>, vector<1x64x256xf32>
    %70 = vector.shape_cast %69 : vector<1x64x256xf32> to vector<64x256xf32>
    %71 = vector.shape_cast %68 : vector<64x256xf32> to vector<1x64x256xf32>
    tpu.vector_store %arg4[%c0_16, %c0_17, %c0_18], %71 {strides = array<i32>} : memref<1x64x256xf32, #tpu.memory_space<vmem>>, vector<1x64x256xf32>,
    return
  }
  func.func @transform_0(%arg0: i32) -> (i32, i32, i32) {
    %c0_i32 = arith.constant 0 : i32
    %c0_i32_0 = arith.constant 0 : i32
    %c0_i32_1 = arith.constant 0 : i32
    return %arg0, %c0_i32, %c0_i32_0 : i32, i32, i32
  }
  func.func @transform_1(%arg0: i32) -> (i32, i32) {
    %c0_i32 = arith.constant 0 : i32
    %c0_i32_0 = arith.constant 0 : i32
    %c0_i32_1 = arith.constant 0 : i32
    return %c0_i32, %c0_i32_0 : i32, i32
  }
  func.func @transform_2(%arg0: i32) -> (i32, i32) {
    %c0_i32 = arith.constant 0 : i32
    %c0_i32_0 = arith.constant 0 : i32
    %c0_i32_1 = arith.constant 0 : i32
    return %c0_i32, %c0_i32_0 : i32, i32
  }
  func.func @transform_3(%arg0: i32) -> (i32, i32, i32) {
    %c0_i32 = arith.constant 0 : i32
    %c0_i32_0 = arith.constant 0 : i32
    %c0_i32_1 = arith.constant 0 : i32
    return %arg0, %c0_i32, %c0_i32_0 : i32, i32, i32
  }
}

</mosaic_0001>

<bundles_post_ra>
// kernel: tpu_custom_call.1
= control target key start
LH: loop header
LB: loop body
LE: loop exit
PB: predicated region body
PF: predicated region fallthrough
CT: control target
= control target key end

     0   :  { %8 = vsyncpa [#allocation3], 0  ;;  %s1771_s0 = inlined_call_operand.hbm [shape: f32[2,64,256], index: 0, kind: input, shape index: {}]   ;;  %s1772_s1 = inlined_call_operand.vmem [shape: f32[64,4], index: 1, kind: input, shape index: {}]   ;;  %s1773_s2 = inlined_call_operand.vmem [shape: f32[64,4], index: 2, kind: input, shape index: {}]   ;;  %s1774_s3 = inlined_call_operand.hbm [shape: f32[2,64,256], index: 3, kind: output, shape index: {}]  }
   0x1   :  { %10 = vsyncpa [#allocation3 + $0x1], 0 }
   0x2   :  { %11 = vsyncpa [#allocation4], 0 }
   0x3   :  { %13 = vsyncpa [#allocation4 + $0x1], 0  ;;  %s1271_s12 = smov 0   ;;  %s1273_s13 = smov 0  }
   0x4   :  { %s1275_s14 = smov 0   ;;  %s1277_s15 = smov 0  }
   0x5 LB: > { %s1292_s16 = sadd.s32 4294967295, %s1238_s15   ;;  %s1001_s17 = sadd.s32 4294967294, %s1238_s15   ;;  %s1238_s15 = sphi %s1277_s15, %s1789_s15   ;;  %s1234_s14 = sphi %s1275_s14, %s1788_s14   ;;  %s1230_s13 = sphi %s1273_s13, %s1787_s13   ;;  %s1226_s12 = sphi %s1271_s12, %s1786_s12  }
   0x6   : > { %s1296_s18 = sadd.s32 1, %s1238_s15   ;;  %s26_s19 = sadd.s32 1, %s1234_s14 }
   0x7   : > { %s23_s20 = ssub.s32 %s1238_s15, %s1296_s18  ;;  %p33_p0 = scmp.ne.s32.totalorder %s1234_s14, %s1230_s13 }
   0x8   : > { %p24_p1 = scmp.eq.s32.totalorder %s23_s20, 0  ;;  %p34_p2 = scmp.eq.s32.totalorder %s1238_s15, 0 }
   0x9   : > { %p39_p3 = scmp.ne.s32.totalorder %s1230_s13, %s1226_s12  ;;  %p40_p4 = scmp.eq.s32.totalorder %s1292_s16, 0 }
   0xa   : > { %s1308_s21 = scalar_select %p24_p1, %s1234_s14, %s26_s19  }
   0xb   : > { %p1310_p5 = por %p34_p2, %p33_p0  ;;  %p1314_p6 = por %p40_p4, %p39_p3 }
   0xc   : > { %p105_p7 = scmp.eq.s32.totalorder %s1292_s16, 1  ;;  %p111_p8 = scmp.eq.s32.totalorder %s1001_s17, 1 }
   0xd   : > { %s1778_s23 = scalar_select %p1314_p6, 1, 0 }
   0xe   : > { %p1029_p10 = scmp.lt.s32.totalorder %s1238_s15, 2  ;;  %p1321_p11 = por %p105_p7, %p33_p0 }
   0xf   : > { %p1325_p12 = por %p111_p8, %p39_p3  ;;  %s137_s26 = sand.u32 1, %s1234_s14  }
  0x10   : > { %s1779_s24 = scalar_select %p1321_p11, 1, 0 }
  0x11   : > { %s1780_s25 = scalar_select %p1325_p12, 1, 0 }
  0x12   : > { %s1015_s27 = sshll.u32 %s1238_s15, 11  ;;  %s1004_s28 = sshll.u32 %s137_s26, 7 }
  0x13   : > { %s1334_s4 = scalar_lea.hbm %s1771_s0, %s1015_s27  ;;  %s141_s5 = scalar_lea.vmem [#allocation2], %s1004_s28 }
  0x14   : > { %s148_s6 = sshll.u32 %s141_s5, 4  ;;  %p1338_p13 = pnand %p1029_p10, %p1310_p5  ;;  %s1342_s6 = int_to_ptr.vmem [resolvable:$true] %s148_s6 }
  0x15   : > { %s1344_s8 = scalar_lea.sflag [#allocation3], %s137_s26  ;;  %s1146_s9 = scalar_lea.hbm %s1334_s4, 2048 }
  0x16   : > { %p1147_p0 = scmp.ne.s32.totalorder %s1334_s4, %s1146_s9  ;;  %p1148_p1 = pneg %p1338_p13 }
  0x17   : > { %s1151_s17 = scalar_lea.hbm %s1771_s0, 4096  ;;  %p1152_p4 = scmp.lt.s32.totalorder %s1334_s4, %s1771_s0 }
  0x18   : > { %p1149_p2 = pnand %p1148_p1, %p1147_p0  ;;  %p1153_p5 = scmp.lt.s32.totalorder %s1151_s17, %s1146_s9 }
  0x1a   : > { %p1150_p3 = pneg %p1149_p2  ;;  %p1154_p7 = por %p1153_p5, %p1152_p4 }
  0x1c   : > { %p1155_p8 = pnand %p1154_p7, %p1150_p3 }
  0x1e   : > { %1158 = shalt.err (!%p1155_p8)
}
  0x1f   : > { %s1159_s22 = scalar_lea.vmem %s1342_s6, 2048  ;;  %s1240_s26 = smov [#allocation2]  }
  0x20   : > { %p1160_p10 = scmp.ne.s32.totalorder %s1342_s6, %s1159_s22  ;;  %s1164_s27 = sshll.u32 %s1240_s26, 4  ;;  %s1165_s27 = int_to_ptr.vmem [resolvable:$false] %s1164_s27 }
  0x21   : > { %s1166_s28 = scalar_lea.vmem %s1165_s27, 4096  ;;  %p1167_p2 = scmp.lt.s32.totalorder %s1342_s6, %s1165_s27 }
  0x22   : > { %p1162_p9 = pnand %p1160_p10, %p1148_p1  ;;  %p1168_p12 = scmp.lt.s32.totalorder %s1166_s28, %s1159_s22 }
  0x24   : > { %p1163_p0 = pneg %p1162_p9  ;;  %p1169_p11 = por %p1168_p12, %p1167_p2 }
  0x26   : > { %p1170_p6 = pnand %p1169_p11, %p1163_p0 }
  0x28   : > { %1173 = shalt.err (!%p1170_p6)
}
  0x29   : > { %s1241_s29 = smov 256   ;;  %s1242_s30 = smov 16  }
  0x2a   : > { %1024 = dma.hbm_to_vmem [thread:$0]  (!%p1338_p13), %s1334_s4, 2048, %s1342_s6, %s1344_s8, %s1241_s29, %s1241_s29, %s1242_s30  }
  0x2b   : > { %p1007_p9 = scmp.ge.s32.totalorder %s1238_s15, 1  ;;  %p156_p1 = scmp.lt.s32.totalorder %s1238_s15, 3 }
  0x2d   : > { %p157_p3 = pnand %p1007_p9, %p156_p1 }
  0x2e   : > { %s1368_s5 = sand.u32 (!%p157_p3), 1, %s1230_s13   ;;  %p1782_p6 = scmp.ne.s32.totalorder (!%p157_p3), %s1778_s23, 0 }
  0x2f   : > { %160 = sbr.rel (%p157_p3) target bundleno = 695 (0x2b7), region = 32  ;;  %s1008_s9 = sshll.u32 (!%p157_p3), %s1368_s5, 7 }
  0x30   : > { %s163_s10 = scalar_lea.sflag (!%p157_p3), [#allocation3], %s1368_s5  ;;  %s1374_s11 = scalar_lea.vmem (!%p157_p3), [#allocation2], %s1008_s9 }
  0x34   : > { %1217 = dma.done.wait (%p1782_p6), %s163_s10, 2048  }
  0x35   : > { %1219 = vsyncadd (%p1782_p6), %s163_s10, 4294965248  ;;  %v1243_v0 = vmov 0   ;;  %v1244_v1 = vmov 3   ;;  %v193_v2 = vld [vmem:[%s1374_s11 + $0x20] sm:$0xff]  ;;  %v194_v3 = vld [vmem:[%s1374_s11 + $0x28] sm:$0xff]  ;;  %v1245_v44 = vmov 1  }
  0x36   : > { %1072 = vset.pattern.permute.xlu1 %v1243_v0  ;;  %1076 = vset.pattern.permute.xlu0 %v1244_v1  ;;  %v189_v4 = vld [vmem:[%s1374_s11] sm:$0xff]  ;;  %v211_v5 = vadd.f32 %v194_v3, %v193_v2  ;;  %v190_v6 = vld [vmem:[%s1374_s11 + $0x8] sm:$0xff]  ;;  %v195_v7 = vld [vmem:[%s1374_s11 + $0x30] sm:$0xff]  ;;  %v243_v29 = vmax.f32 %v193_v2, %v194_v3  ;;  %v1246_v47 = vmov 2   ;;  %vm261_vm0 = vcmask 7168   ;;  %s1247_s6 = smov 127  }
  0x37   : > { %v196_v8 = vld [vmem:[%s1374_s11 + $0x38] sm:$0xff]  ;;  %v205_v9 = vadd.f32 %v190_v6, %v189_v4  ;;  %v191_v10 = vld [vmem:[%s1374_s11 + $0x10] sm:$0xff]  ;;  %v197_v16 = vld [vmem:[%s1374_s11 + $0x40] sm:$0xff]  ;;  %v237_v27 = vmax.f32 %v189_v4, %v190_v6  ;;  %vm334_vm1 = vcmask 15360   ;;  %vm539_vm2 = vcmask 1040384   ;;  %s1689_s7 = scalar_lea.vmem [#allocation5], %s1008_s9 }
  0x38   : > { %v192_v11 = vld [vmem:[%s1374_s11 + $0x18] sm:$0xff]  ;;  %212 = vadd.xlane.f32.xlu1 %v211_v5  ;;  %v214_v12 = vadd.f32 %v196_v8, %v195_v7  ;;  %v199_v14 = vld [vmem:[%s1374_s11 + $0x50] sm:$0xff]  ;;  %v198_v17 = vld [vmem:[%s1374_s11 + $0x48] sm:$0xff]  ;;  %v246_v28 = vmax.f32 %v195_v7, %v196_v8  ;;  %vm541_vm3 = vcmask 1041408   ;;  %vm543_vm4 = vcmask 1042432   ;;  %s1016_s9 = sshll.u32 %s1292_s16, 11 }
  0x39   : > { %206 = vadd.xlane.f32.xlu0 %v205_v9  ;;  %v208_v13 = vadd.f32 %v192_v11, %v191_v10  ;;  %v200_v15 = vld [vmem:[%s1374_s11 + $0x58] sm:$0xff]  ;;  %v217_v19 = vadd.f32 %v198_v17, %v197_v16  ;;  %v203_v20 = vld [vmem:[%s1374_s11 + $0x70] sm:$0xff]  ;;  %v201_v22 = vld [vmem:[%s1374_s11 + $0x60] sm:$0xff]  ;;  %v240_v26 = vmax.f32 %v191_v10, %v192_v11  ;;  %v249_v31 = vmax.f32 %v197_v16, %v198_v17  ;;  %s928_s8 = sshll.u32 %s1689_s7, 4  ;;  %s1722_s20 = scalar_lea.hbm %s1774_s3, %s1016_s9  ;;  %s1724_s8 = int_to_ptr.vmem [resolvable:$true] %s928_s8 }
  0x3a   : > { %v220_v18 = vadd.f32 %v200_v15, %v199_v14  ;;  %v204_v21 = vld [vmem:[%s1374_s11 + $0x78] sm:$0xff]  ;;  %v202_v23 = vld [vmem:[%s1374_s11 + $0x68] sm:$0xff]  ;;  %v252_v30 = vmax.f32 %v199_v14, %v200_v15  ;;  %v272_v35 = vld [vmem:[%s1772_s1 + $0x10] sm:$0xff]  ;;  %s915_s16 = scalar_lea.sflag [#allocation4], %s1368_s5  ;;  %s1174_s22 = scalar_lea.vmem %s1724_s8, 2048 }
  0x3b   : > { %v226_v24 = vadd.f32 %v204_v21, %v203_v20  ;;  %v223_v25 = vadd.f32 %v202_v23, %v201_v22  ;;  %v258_v32 = vmax.f32 %v203_v20, %v204_v21  ;;  %v255_v33 = vmax.f32 %v201_v22, %v202_v23  ;;  %v271_v34 = vld [vmem:[%s1772_s1 + $0x8] sm:$0xff]  ;;  %v273_v36 = vld [vmem:[%s1772_s1 + $0x18] sm:$0xff]  ;;  %v274_v37 = vld [vmem:[%s1772_s1 + $0x20] sm:$0xff]  ;;  %p1175_p11 = scmp.ne.s32.totalorder %s1724_s8, %s1174_s22  ;;  %p1783_p12 = scmp.ne.s32.totalorder %s1779_s24, 0 }
  0x3c   : > { %215 = vadd.xlane.f32.xlu1 %v214_v12  ;;  %v276_v38 = vld [vmem:[%s1772_s1 + $0x30] sm:$0xff]  ;;  %v275_v39 = vld [vmem:[%s1772_s1 + $0x28] sm:$0xff]  ;;  %v270_v40 = vld [vmem:[%s1772_s1] sm:$0xff]  ;;  %s1248_s26 = smov [#allocation5]  }
  0x3d   : > { %209 = vadd.xlane.f32.xlu0 %v208_v13  ;;  %v1423_v41 = vld [vmem:[%s1773_s2] sm:$0xff]  ;;  %v277_v42 = vld [vmem:[%s1772_s1 + $0x38] sm:$0xff]  ;;  %v1439_v45 = vld [vmem:[%s1773_s2 + $0x28] sm:$0xff]  ;;  %p1176_p13 = pnand %p1175_p11, %p1783_p12  ;;  %s1178_s27 = sshll.u32 %s1248_s26, 4  ;;  %s1179_s27 = int_to_ptr.vmem [resolvable:$false] %s1178_s27 }
  0x3e   : > { %v1432_v43 = vld [vmem:[%s1773_s2 + $0x18] sm:$0xff]  ;;  %v1456_v48 = vld [vmem:[%s1773_s2 + $0x8] sm:$0xff]  ;;  %v1463_v49 = vld [vmem:[%s1773_s2 + $0x20] sm:$0xff]  ;;  %s1180_s28 = scalar_lea.vmem %s1179_s27, 4096  ;;  %p1181_p5 = scmp.lt.s32.totalorder %s1724_s8, %s1179_s27 }
  0x3f   : > { %v1445_v46 = vld [vmem:[%s1773_s2 + $0x38] sm:$0xff]  ;;  %v1469_v50 = vld [vmem:[%s1773_s2 + $0x30] sm:$0xff]  ;;  %p1177_p4 = pneg %p1176_p13  ;;  %p1182_p7 = scmp.lt.s32.totalorder %s1180_s28, %s1174_s22 }
  0x40   : > { %221 = vadd.xlane.f32.xlu1 %v220_v18  ;;  %v1494_v58 = vld [vmem:[%s1773_s2 + $0x10] sm:$0xff] }
  0x41   : > { %218 = vadd.xlane.f32.xlu0 %v217_v19  ;;  %p1183_p8 = por %p1182_p7, %p1181_p5 }
  0x43   : > { %p1184_p10 = pnand %p1183_p8, %p1177_p4 }
  0x44   : > { %227 = vadd.xlane.f32.xlu1 %v226_v24 }
  0x45   : > { %224 = vadd.xlane.f32.xlu0 %v223_v25 }
  0x48   : > { %241 = vmax.xlane.f32.xlu1 %v240_v26 }
  0x49   : > { %238 = vmax.xlane.f32.xlu0 %v237_v27 }
  0x4c   : > { %247 = vmax.xlane.f32.xlu1 %v246_v28 }
  0x4d   : > { %244 = vmax.xlane.f32.xlu0 %v243_v29 }
  0x50   : > { %253 = vmax.xlane.f32.xlu1 %v252_v30 }
  0x51   : > { %250 = vmax.xlane.f32.xlu0 %v249_v31 }
  0x54   : > { %259 = vmax.xlane.f32.xlu1 %v258_v32 }
  0x55   : > { %256 = vmax.xlane.f32.xlu0 %v255_v33 }
  0x65   : > { %293 = vperm.xlu1 %1072, %v271_v34  }
  0x69   : > { %298 = vperm.xlu1 %1072, %v272_v35  }
  0x6b   : > { %483 = vperm.xlu0 %1076, %v271_v34  }
  0x6d   : > { %303 = vperm.xlu1 %1072, %v273_v36  }
  0x6f   : > { %487 = vperm.xlu0 %1076, %v272_v35  }
  0x71   : > { %308 = vperm.xlu1 %1072, %v274_v37  }
  0x73   : > { %503 = vperm.xlu0 %1076, %v276_v38  }
  0x75   : > { %313 = vperm.xlu1 %1072, %v275_v39  }
  0x77   : > { %1086 = vset.pattern.permute.xlu0 %v1243_v0 }
  0x78   : > { %288 = vperm.xlu0 %1086, %v270_v40  }
  0x79   : > { %318 = vperm.xlu1 %1072, %v276_v38  }
  0x7c   : > { %548 = vperm.xlu0 %1086, %v1423_v41  }
  0x7d   : > { %323 = vperm.xlu1 %1072, %v277_v42  }
  0x80   : > { %563 = vperm.xlu0 %1086, %v1432_v43  }
  0x81   : > { %1073 = vset.pattern.permute.xlu1 %v1245_v44 }
  0x82   : > { %357 = vperm.xlu1 %1073, %v270_v40  }
  0x84   : > { %573 = vperm.xlu0 %1086, %v1439_v45  }
  0x86   : > { %1074 = vset.pattern.permute.xlu1 %v1246_v47 }
  0x87   : > { %418 = vperm.xlu1 %1074, %v270_v40  }
  0x88   : > { %583 = vperm.xlu0 %1086, %v1445_v46  }
  0x8b   : > { %422 = vperm.xlu1 %1074, %v271_v34  }
  0x8c   : > { %1090 = vset.pattern.permute.xlu0 %v1245_v44 }
  0x8d   : > { %361 = vperm.xlu0 %1090, %v271_v34  }
  0x8f   : > { %1075 = vset.pattern.permute.xlu1 %v1244_v1 }
  0x90   : > { %479 = vperm.xlu1 %1075, %v270_v40  }
  0x91   : > { %365 = vperm.xlu0 %1090, %v272_v35  }
  0x94   : > { %1077 = vset.pattern.permute.xlu1 %v1246_v47 }
  0x95   : > { %373 = vperm.xlu0 %1090, %v274_v37   ;;  %426 = vperm.xlu1 %1077, %v272_v35  }
  0x99   : > { %377 = vperm.xlu0 %1090, %v275_v39   ;;  %1078 = vset.pattern.permute.xlu1 %v1245_v44 }
  0x9a   : > { %369 = vperm.xlu1 %1078, %v273_v36  }
  0x9d   : > { %603 = vperm.xlu0 %1090, %v1456_v48  }
  0x9e   : > { %1079 = vset.pattern.permute.xlu1 %v1246_v47 }
  0x9f   : > { %430 = vperm.xlu1 %1079, %v273_v36  }
  0xa1   : > { %615 = vperm.xlu0 %1090, %v1463_v49  }
  0xa3   : > { %1080 = vset.pattern.permute.xlu1 %v1244_v1 }
  0xa4   : > { %491 = vperm.xlu1 %1080, %v273_v36  }
  0xa5   : > { %623 = vperm.xlu0 %1090, %v1469_v50  }
  0xa8   : > { %1081 = vset.pattern.permute.xlu1 %v1246_v47 }
  0xa9   : > { %1092 = vset.pattern.permute.xlu0 %v1246_v47  ;;  %434 = vperm.xlu1 %1081, %v274_v37  }
  0xaa   : > { %438 = vperm.xlu0 %1092, %v275_v39  }
  0xad   : > { %1082 = vset.pattern.permute.xlu1 %v1244_v1 }
  0xae   : > { %442 = vperm.xlu0 %1092, %v276_v38   ;;  %495 = vperm.xlu1 %1082, %v274_v37  }
  0xb2   : > { %1083 = vset.pattern.permute.xlu1 %v1245_v44  ;;  %651 = vperm.xlu0 %1092, %v1423_v41  }
  0xb3   : > { %381 = vperm.xlu1 %1083, %v276_v38  }
  0xb6   : > { %663 = vperm.xlu0 %1092, %v1432_v43  }
  0xb7   : > { %1084 = vset.pattern.permute.xlu1 %v1244_v1 }
  0xb8   : > { %499 = vperm.xlu1 %1084, %v275_v39  }
  0xba   : > { %671 = vperm.xlu0 %1092, %v1439_v45  }
  0xbc   : > { %1085 = vset.pattern.permute.xlu1 %v1245_v44 }
  0xbd   : > { %385 = vperm.xlu1 %1085, %v277_v42  }
  0xbe   : > { %679 = vperm.xlu0 %1092, %v1445_v46  }
  0xc1   : > { %v213_v51 = vpop.xlane.xlu1 %212  ;;  %1087 = vset.pattern.permute.xlu1 %v1246_v47 }
  0xc2   : > { %v207_v52 = vpop.xlane.xlu0 %206  ;;  %446 = vperm.xlu1 %1087, %v277_v42   ;;  %1095 = vset.pattern.permute.xlu0 %v1244_v1  ;;  %v231_v16 = vmul.f32 0.00390625, %v213_v51 }
  0xc3   : > { %707 = vperm.xlu0 %1095, %v1456_v48   ;;  %v229_v60 = vmul.f32 0.00390625, %v207_v52 }
  0xc5   : > { %v216_v53 = vpop.xlane.xlu1 %215 }
  0xc6   : > { %v210_v54 = vpop.xlane.xlu0 %209  ;;  %1088 = vset.pattern.permute.xlu1 %v1244_v1  ;;  %v232_v27 = vmul.f32 0.00390625, %v216_v53 }
  0xc7   : > { %507 = vperm.xlu1 %1088, %v277_v42   ;;  %719 = vperm.xlu0 %1095, %v1463_v49   ;;  %v230_v9 = vmul.f32 0.00390625, %v210_v54 }
  0xc9   : > { %v222_v55 = vpop.xlane.xlu1 %221 }
  0xca   : > { %v219_v56 = vpop.xlane.xlu0 %218  ;;  %v234_v36 = vmul.f32 0.00390625, %v222_v55 }
  0xcb   : > { %1089 = vset.pattern.permute.xlu1 %v1243_v0  ;;  %727 = vperm.xlu0 %1095, %v1469_v50   ;;  %v233_v4 = vmul.f32 0.00390625, %v219_v56 }
  0xcc   : > { %553 = vperm.xlu1 %1089, %v1456_v48  }
  0xcd   : > { %v228_v57 = vpop.xlane.xlu1 %227 }
  0xce   : > { %v225_v59 = vpop.xlane.xlu0 %224  ;;  %v236_v37 = vmul.f32 0.00390625, %v228_v57 }
  0xcf   : > { %1096 = vset.pattern.permute.xlu0 %v1243_v0  ;;  %v235_v7 = vmul.f32 0.00390625, %v225_v59 }
  0xd0   : > { %558 = vperm.xlu1 %1089, %v1494_v58  }
  0xd1   : > { %v242_v61 = vpop.xlane.xlu1 %241 }
  0xd2   : > { %v239_v62 = vpop.xlane.xlu0 %238  ;;  %v1512_v13 = vsel %vm261_vm0, %v230_v9, %v242_v61 }
  0xd3   : > { %v1499_v63 = vsel %vm261_vm0, %v229_v60, %v239_v62 }
  0xd4   : > { %568 = vperm.xlu1 %1089, %v1463_v49  }
  0xd5   : > { %v248_v2 = vpop.xlane.xlu1 %247 }
  0xd6   : > { %v245_v3 = vpop.xlane.xlu0 %244  ;;  %v1532_v30 = vsel %vm261_vm0, %v232_v27, %v248_v2 }
  0xd7   : > { %v1517_v17 = vsel %vm261_vm0, %v231_v16, %v245_v3 }
  0xd8   : > { %578 = vperm.xlu1 %1089, %v1469_v50  }
  0xd9   : > { %v254_v5 = vpop.xlane.xlu1 %253 }
  0xda   : > { %v251_v6 = vpop.xlane.xlu0 %250  ;;  %v1543_v42 = vsel %vm261_vm0, %v234_v36, %v254_v5 }
  0xdb   : > { %v1504_v8 = vsel %vm261_vm0, %v233_v4, %v251_v6 }
  0xdc   : > { %1091 = vset.pattern.permute.xlu1 %v1245_v44 }
  0xdd   : > { %599 = vperm.xlu1 %1091, %v1423_v41   ;;  %v260_v10 = vpop.xlane.xlu1 %259 }
  0xde   : > { %v257_v11 = vpop.xlane.xlu0 %256  ;;  %v1546_v44 = vsel %vm261_vm0, %v236_v37, %v260_v10 }
  0xdf   : > { %v1509_v12 = vsel %vm261_vm0, %v235_v7, %v257_v11 }
  0xe1   : > { %607 = vperm.xlu1 %1091, %v1494_v58   ;;  %v294_v14 = vpop.permute.xlu1 %293 }
  0xe2   : > { %v327_v15 = vmul.f32 %v294_v14, %v1512_v13 }
  0xe4   : > { %v336_v32 = vsel %vm334_vm1, %v327_v15, 0.0 }
  0xe5   : > { %611 = vperm.xlu1 %1091, %v1432_v43   ;;  %v299_v18 = vpop.permute.xlu1 %298 }
  0xe6   : > { %v328_v19 = vmul.f32 %v299_v18, %v1517_v17  ;;  %v484_v20 = vpop.permute.xlu0 %483 }
  0xe8   : > { %v338_v40 = vsel %vm334_vm1, %v328_v19, 0.0 }
  0xe9   : > { %619 = vperm.xlu1 %1091, %v1439_v45   ;;  %v304_v21 = vpop.permute.xlu1 %303 }
  0xea   : > { %v1522_v22 = vpop.permute.xlu0 %487  ;;  %v329_v33 = vmul.f32 %v304_v21, %v1532_v30 }
  0xec   : > { %v340_v51 = vsel %vm334_vm1, %v329_v33, 0.0 }
  0xed   : > { %627 = vperm.xlu1 %1091, %v1445_v46   ;;  %v309_v23 = vpop.permute.xlu1 %308 }
  0xee   : > { %v330_v24 = vmul.f32 %v309_v23, %v1504_v8  ;;  %v1526_v25 = vpop.permute.xlu0 %503 }
  0xf0   : > { %v342_v56 = vsel %vm334_vm1, %v330_v24, 0.0 }
  0xf1   : > { %1093 = vset.pattern.permute.xlu1 %v1246_v47  ;;  %v314_v26 = vpop.permute.xlu1 %313 }
  0xf2   : > { %655 = vperm.xlu1 %1093, %v1456_v48   ;;  %v331_v52 = vmul.f32 %v314_v26, %v1543_v42 }
  0xf3   : > { %v289_v28 = vpop.permute.xlu0 %288 }
  0xf4   : > { %v326_v29 = vmul.f32 %v289_v28, %v1499_v63  ;;  %v344_v60 = vsel %vm334_vm1, %v331_v52, 0.0 }
  0xf5   : > { %v319_v31 = vpop.permute.xlu1 %318 }
  0xf6   : > { %v335_v34 = vsel %vm334_vm1, %v326_v29, 0.0  ;;  %v332_v35 = vmul.f32 %v319_v31, %v1509_v12  ;;  %659 = vperm.xlu1 %1093, %v1494_v58  }
  0xf7   : > { %v337_v38 = vadd.f32 %v336_v32, %v335_v34  ;;  %v1539_v39 = vpop.permute.xlu0 %548 }
  0xf8   : > { %v346_v2 = vsel %vm334_vm1, %v332_v35, 0.0 }
  0xf9   : > { %v339_v47 = vadd.f32 %v338_v40, %v337_v38  ;;  %v324_v48 = vpop.permute.xlu1 %323 }
  0xfa   : > { %v333_v53 = vmul.f32 %v324_v48, %v1546_v44  ;;  %667 = vperm.xlu1 %1093, %v1463_v49  }
  0xfb   : > { %v341_v54 = vadd.f32 %v340_v51, %v339_v47  ;;  %v1552_v55 = vpop.permute.xlu0 %563 }
  0xfc   : > { %v348_v4 = vsel %vm334_vm1, %v333_v53, 0.0 }
  0xfd   : > { %v343_v57 = vadd.f32 %v342_v56, %v341_v54  ;;  %v358_v59 = vpop.permute.xlu1 %357 }
  0xfe   : > { %675 = vperm.xlu1 %1093, %v1469_v50   ;;  %v388_v9 = vmul.f32 %v358_v59, %v1499_v63 }
  0xff   : > { %v345_v61 = vadd.f32 %v344_v60, %v343_v57  ;;  %v1557_v62 = vpop.permute.xlu0 %573 }
 0x100   : > { %v396_v18 = vsel %vm334_vm1, %v388_v9, 0.0 }
 0x101   : > { %v347_v3 = vadd.f32 %v346_v2, %v345_v61 }
 0x102   : > { %1094 = vset.pattern.permute.xlu1 %v1244_v1  ;;  %v419_v49 = vpop.permute.xlu1 %418 }
 0x103   : > { %v1562_v5 = vadd.f32 %v348_v4, %v347_v3  ;;  %703 = vperm.xlu1 %1094, %v1423_v41   ;;  %v1565_v6 = vpop.permute.xlu0 %583  ;;  %v449_v7 = vmul.f32 %v419_v49, %v1499_v63  ;;  %v511_v41 = vmul.f32 %v484_v20, %v1512_v13 }
 0x105   : > { %v457_v14 = vsel %vm334_vm1, %v449_v7, 0.0  ;;  %v519_v28 = vsel %vm334_vm1, %v511_v41, 0.0 }
 0x106   : > { %v423_v50 = vpop.permute.xlu1 %422 }
 0x107   : > { %v450_v10 = vmul.f32 %v423_v50, %v1512_v13  ;;  %711 = vperm.xlu1 %1094, %v1494_v58   ;;  %v512_v58 = vmul.f32 %v1522_v22, %v1517_v17 }
 0x108   : > { %v362_v11 = vpop.permute.xlu0 %361 }
 0x109   : > { %v458_v1 = vsel %vm334_vm1, %v450_v10, 0.0  ;;  %v389_v15 = vmul.f32 %v362_v11, %v1512_v13 }
 0x10a   : > { %v459_v16 = vadd.f32 %v458_v1, %v457_v14 }
 0x10b   : > { %v397_v19 = vsel %vm334_vm1, %v389_v15, 0.0  ;;  %715 = vperm.xlu1 %1094, %v1432_v43   ;;  %v480_v21 = vpop.permute.xlu1 %479  ;;  %v521_v43 = vsel %vm334_vm1, %v512_v58, 0.0 }
 0x10c   : > { %v398_v23 = vadd.f32 %v397_v19, %v396_v18  ;;  %v510_v24 = vmul.f32 %v480_v21, %v1499_v63  ;;  %v366_v26 = vpop.permute.xlu0 %365 }
 0x10d   : > { %v390_v27 = vmul.f32 %v366_v26, %v1517_v17 }
 0x10e   : > { %v518_v13 = vsel %vm334_vm1, %v510_v24, 0.0 }
 0x10f   : > { %v520_v20 = vadd.f32 %v519_v28, %v518_v13  ;;  %v399_v29 = vsel %vm334_vm1, %v390_v27, 0.0  ;;  %723 = vperm.xlu1 %1094, %v1439_v45   ;;  %v350_v13 = vrot.slane %v1562_v5, 4 }
 0x110   : > { %v400_v31 = vadd.f32 %v399_v29, %v398_v23  ;;  %v374_v32 = vpop.permute.xlu0 %373  ;;  %v427_v22 = vpop.permute.xlu1 %426 }
 0x111   : > { %v451_v33 = vmul.f32 %v427_v22, %v1517_v17  ;;  %v522_v63 = vadd.f32 %v521_v43, %v520_v20  ;;  %v392_v38 = vmul.f32 %v374_v32, %v1504_v8  ;;  %v351_v32 = vadd.f32 %v350_v13, %v1562_v5 }
 0x113   : > { %v460_v34 = vsel %vm334_vm1, %v451_v33, 0.0  ;;  %731 = vperm.xlu1 %1094, %v1445_v46   ;;  %v403_v17 = vsel %vm334_vm1, %v392_v38, 0.0 }
 0x114   : > { %v461_v35 = vadd.f32 %v460_v34, %v459_v16  ;;  %v378_v36 = vpop.permute.xlu0 %377 }
 0x115   : > { %v370_v37 = vpop.permute.xlu1 %369  ;;  %v393_v1 = vmul.f32 %v378_v36, %v1543_v42 }
 0x116   : > { %v391_v40 = vmul.f32 %v370_v37, %v1532_v30 }
 0x117   : > { %1097 = vset.pattern.permute.xlu1 %v1243_v0  ;;  %v405_v58 = vsel %vm334_vm1, %v393_v1, 0.0 }
 0x118   : > { %v401_v45 = vsel %vm334_vm1, %v391_v40, 0.0  ;;  %v1594_v47 = vpop.permute.xlu0 %603 }
 0x119   : > { %v402_v48 = vadd.f32 %v401_v45, %v400_v31 }
 0x11a   : > { %v431_v51 = vpop.permute.xlu1 %430 }
 0x11b   : > { %v404_v52 = vadd.f32 %v403_v17, %v402_v48  ;;  %v452_v46 = vmul.f32 %v431_v51, %v1532_v30 }
 0x11c   : > { %v1597_v53 = vpop.permute.xlu0 %615 }
 0x11d   : > { %v462_v57 = vsel %vm334_vm1, %v452_v46, 0.0  ;;  %v406_v24 = vadd.f32 %v405_v58, %v404_v52  ;;  %v586_v58 = vlaneseq }
 0x11e   : > { %v463_v2 = vadd.f32 %v462_v57, %v461_v35  ;;  %v352_v35 = vrot.slane %v351_v32, 2 }
 0x11f   : > { %v492_v54 = vpop.permute.xlu1 %491 }
 0x120   : > { %v1600_v56 = vpop.permute.xlu0 %623  ;;  %v513_v0 = vmul.f32 %v492_v54, %v1532_v30 }
 0x122   : > { %v523_v49 = vsel %vm334_vm1, %v513_v0, 0.0 }
 0x123   : > { %v524_v15 = vadd.f32 %v523_v49, %v522_v63 }
 0x124   : > { %v435_v59 = vpop.permute.xlu1 %434 }
 0x125   : > { %v453_v60 = vmul.f32 %v435_v59, %v1504_v8  ;;  %v439_v61 = vpop.permute.xlu0 %438 }
 0x126   : > { %v454_v3 = vmul.f32 %v439_v61, %v1543_v42 }
 0x127   : > { %v464_v4 = vsel %vm334_vm1, %v453_v60, 0.0 }
 0x128   : > { %v465_v7 = vadd.f32 %v464_v4, %v463_v2  ;;  %v466_v50 = vsel %vm334_vm1, %v454_v3, 0.0 }
 0x129   : > { %v443_v9 = vpop.permute.xlu0 %442  ;;  %v496_v10 = vpop.permute.xlu1 %495 }
 0x12a   : > { %v467_v11 = vadd.f32 %v466_v50, %v465_v7  ;;  %v455_v14 = vmul.f32 %v443_v9, %v1509_v12  ;;  %v514_v30 = vmul.f32 %v496_v10, %v1504_v8  ;;  %v516_v8 = vmul.f32 %v1526_v25, %v1509_v12 }
 0x12c   : > { %v468_v41 = vsel %vm334_vm1, %v455_v14, 0.0  ;;  %v525_v16 = vsel %vm334_vm1, %v514_v30, 0.0  ;;  %v529_v31 = vsel %vm334_vm1, %v516_v8, 0.0 }
 0x12d   : > { %v469_v18 = vadd.f32 %v468_v41, %v467_v11  ;;  %v526_v19 = vadd.f32 %v525_v16, %v524_v15 }
 0x12e   : > { %v382_v21 = vpop.permute.xlu1 %381 }
 0x12f   : > { %v394_v23 = vmul.f32 %v382_v21, %v1509_v12 }
 0x131   : > { %v407_v26 = vsel %vm334_vm1, %v394_v23, 0.0 }
 0x132   : > { %v408_v27 = vadd.f32 %v407_v26, %v406_v24  ;;  %v587_v26 = vshrl.u32 %v586_v58, 7 }
 0x133   : > { %v500_v28 = vpop.permute.xlu1 %499 }
 0x134   : > { %v515_v20 = vmul.f32 %v500_v28, %v1543_v42  ;;  %v353_v42 = vadd.f32 %v352_v35, %v351_v32  ;;  %v588_v28 = vsub.s32 0, %v587_v26  ;;  %v632_v8 = vsub.s32 1, %v587_v26 }
 0x135   : > { %v684_v32 = vsub.s32 2, %v587_v26 }
 0x136   : > { %v527_v29 = vsel %vm334_vm1, %v515_v20, 0.0  ;;  %v354_v52 = vrot.slane %v353_v42, 1 }
 0x137   : > { %v528_v43 = vadd.f32 %v527_v29, %v526_v19  ;;  %v652_v19 = vpop.permute.xlu0 %651 }
 0x138   : > { %v386_v22 = vpop.permute.xlu1 %385  ;;  %v355_v2 = vadd.f32 %v354_v52, %v353_v42 }
 0x139   : > { %v395_v33 = vmul.f32 %v386_v22, %v1546_v44  ;;  %v530_v63 = vadd.f32 %v529_v31, %v528_v43  ;;  %v736_v22 = vsub.s32 3, %v587_v26 }
 0x13b   : > { %v409_v34 = vsel %vm334_vm1, %v395_v33, 0.0  ;;  %v664_v24 = vpop.permute.xlu0 %663 }
 0x13c   : > { %v410_v36 = vadd.f32 %v409_v34, %v408_v27 }
 0x13d   : > { %v447_v12 = vpop.permute.xlu1 %446 }
 0x13e   : > { %v411_v25 = vrot.slane %v410_v36, 4  ;;  %v456_v37 = vmul.f32 %v447_v12, %v1546_v44 }
 0x13f   : > { %v1630_v20 = vpop.permute.xlu0 %671 }
 0x140   : > { %v412_v38 = vadd.f32 %v411_v25, %v410_v36  ;;  %v470_v40 = vsel %vm334_vm1, %v456_v37, 0.0 }
 0x141   : > { %v471_v45 = vadd.f32 %v470_v40, %v469_v18 }
 0x142   : > { %v413_v48 = vrot.slane %v412_v38, 2  ;;  %v508_v17 = vpop.permute.xlu1 %507 }
 0x143   : > { %v472_v5 = vrot.slane %v471_v45, 4  ;;  %v517_v51 = vmul.f32 %v508_v17, %v1546_v44 }
 0x144   : > { %v414_v46 = vadd.f32 %v413_v48, %v412_v38 }
 0x145   : > { %v473_v54 = vadd.f32 %v472_v5, %v471_v45  ;;  %v531_v57 = vsel %vm334_vm1, %v517_v51, 0.0 }
 0x146   : > { %v415_v0 = vrot.slane %v414_v46, 1  ;;  %v532_v59 = vadd.f32 %v531_v57, %v530_v63  ;;  %v1634_v63 = vpop.permute.xlu0 %679 }
 0x147   : > { %v474_v60 = vrot.slane %v473_v54, 2  ;;  %v554_v61 = vpop.permute.xlu1 %553 }
 0x148   : > { %v416_v3 = vadd.f32 %v415_v0, %v414_v46  ;;  %v533_v4 = vrot.slane %v532_v59, 4 }
 0x149   : > { %v475_v49 = vadd.f32 %v474_v60, %v473_v54 }
 0x14a   : > { %v540_v7 = vsel %vm539_vm2, %v355_v2, %v416_v3  ;;  %v534_v50 = vadd.f32 %v533_v4, %v532_v59  ;;  %v708_v38 = vpop.permute.xlu0 %707 }
 0x14b   : > { %v476_v9 = vrot.slane %v475_v49, 1  ;;  %v559_v10 = vpop.permute.xlu1 %558 }
 0x14c   : > { %v535_v44 = vrot.slane %v534_v50, 2 }
 0x14d   : > { %v477_v11 = vadd.f32 %v476_v9, %v475_v49 }
 0x14e   : > { %v536_v14 = vadd.f32 %v535_v44, %v534_v50 }
 0x14f   : > { %v542_v30 = vsel %vm541_vm3, %v540_v7, %v477_v11  ;;  %v569_v1 = vpop.permute.xlu1 %568 }
 0x150   : > { %v537_v15 = vrot.slane %v536_v14, 1 }
 0x152   : > { %v538_v41 = vadd.f32 %v537_v15, %v536_v14 }
 0x153   : > { %v579_v16 = vpop.permute.xlu1 %578 }
 0x154   : > { %v544_v18 = vsel %vm543_vm4, %v542_v30, %v538_v41 }
 0x155   : > { %v545_v13 = vmax.f32 %v544_v18, 0.0 }
 0x157   : > { %v1632_v43 = vrot.slane %v545_v13, %v588_v28  ;;  %v633_v31 = vrot.slane %v545_v13, %v632_v8  ;;  %v1638_v36 = vrot.slane %v545_v13, %v684_v32  ;;  %v1640_v12 = vrot.slane %v545_v13, %v736_v22 }
 0x158   : > { %v600_v21 = vpop.permute.xlu1 %599 }
 0x159   : > { %v591_v34 = vmul.f32 %v1632_v43, %v554_v61  ;;  %v635_v35 = vmul.f32 %v633_v31, %v1594_v47  ;;  %v739_v40 = vmul.f32 %v1640_v12, %v708_v38  ;;  %v590_v5 = vmul.f32 %v1632_v43, %v1539_v39  ;;  %v720_v39 = vpop.permute.xlu0 %719 }
 0x15a   : > { %v634_v51 = vmul.f32 %v633_v31, %v600_v21  ;;  %v686_v57 = vmul.f32 %v1638_v36, %v652_v19  ;;  %v592_v0 = vmul.f32 %v1632_v43, %v559_v10  ;;  %v594_v59 = vmul.f32 %v1632_v43, %v569_v1 }
 0x15b   : > { %v643_v37 = vadd.f32 %v635_v35, %v591_v34  ;;  %v638_v60 = vmul.f32 %v633_v31, %v1597_v53  ;;  %v593_v50 = vmul.f32 %v1632_v43, %v1552_v55  ;;  %v596_v11 = vmul.f32 %v1632_v43, %v579_v16 }
 0x15c   : > { %v608_v23 = vpop.permute.xlu1 %607  ;;  %v642_v46 = vadd.f32 %v634_v51, %v590_v5  ;;  %v640_v53 = vmul.f32 %v633_v31, %v1600_v56  ;;  %v689_v18 = vmul.f32 %v1638_v36, %v664_v24  ;;  %v595_v55 = vmul.f32 %v1632_v43, %v1557_v62 }
 0x15d   : > { %v636_v54 = vmul.f32 %v633_v31, %v608_v23  ;;  %v646_v10 = vadd.f32 %v638_v60, %v594_v59  ;;  %v742_v56 = vmul.f32 %v1640_v12, %v720_v39  ;;  %v728_v26 = vpop.permute.xlu0 %727  ;;  %v691_v24 = vmul.f32 %v1638_v36, %v1630_v20 }
 0x15e   : > { %v694_v4 = vadd.f32 %v686_v57, %v642_v46  ;;  %v648_v16 = vadd.f32 %v640_v53, %v596_v11  ;;  %v597_v62 = vmul.f32 %v1632_v43, %v1565_v6  ;;  %v744_v34 = vmul.f32 %v1640_v12, %v728_v26 }
 0x15f   : > { %v644_v7 = vadd.f32 %v636_v54, %v592_v0  ;;  %v693_v20 = vmul.f32 %v1638_v36, %v1634_v63 }
 0x160   : > { %v612_v27 = vpop.permute.xlu1 %611 }
 0x161   : > { %v637_v2 = vmul.f32 %v633_v31, %v612_v27 }
 0x163   : > { %v645_v30 = vadd.f32 %v637_v2, %v593_v50 }
 0x164   : > { %v620_v29 = vpop.permute.xlu1 %619 }
 0x165   : > { %v639_v1 = vmul.f32 %v633_v31, %v620_v29  ;;  %v697_v8 = vadd.f32 %v689_v18, %v645_v30 }
 0x167   : > { %v647_v27 = vadd.f32 %v639_v1, %v595_v55 }
 0x168   : > { %v628_v33 = vpop.permute.xlu1 %627 }
 0x169   : > { %v641_v28 = vmul.f32 %v633_v31, %v628_v33 }
 0x16d   : > { %v656_v25 = vpop.permute.xlu1 %655 }
 0x16e   : > { %v687_v42 = vmul.f32 %v1638_v36, %v656_v25  ;;  %v649_v25 = vadd.f32 %v641_v28, %v597_v62 }
 0x170   : > { %v695_v45 = vadd.f32 %v687_v42, %v643_v37  ;;  %v699_v37 = vadd.f32 %v691_v24, %v647_v27  ;;  %v701_v43 = vadd.f32 %v693_v20, %v649_v25  ;;  %v1130_v20 = vld [vmem:[%s1374_s11 + $0x10] sm:$0xff] }
 0x171   : > { %v660_v48 = vpop.permute.xlu1 %659 }
 0x172   : > { %v1644_v17 = vadd.f32 %v739_v40, %v695_v45  ;;  %v688_v3 = vmul.f32 %v1638_v36, %v660_v48 }
 0x174   : > { %764 = vrot.lane.b32.xlu1 %v1644_v17, %s1247_s6  ;;  %v696_v15 = vadd.f32 %v688_v3, %v644_v7 }
 0x175   : > { %v668_v47 = vpop.permute.xlu1 %667 }
 0x176   : > { %v690_v9 = vmul.f32 %v1638_v36, %v668_v47 }
 0x178   : > { %v698_v19 = vadd.f32 %v690_v9, %v646_v10 }
 0x179   : > { %v676_v52 = vpop.permute.xlu1 %675 }
 0x17a   : > { %v692_v21 = vmul.f32 %v1638_v36, %v676_v52  ;;  %v750_v22 = vadd.f32 %v742_v56, %v698_v19 }
 0x17c   : > { %v700_v29 = vadd.f32 %v692_v21, %v648_v16 }
 0x17e   : > { %v704_v61 = vpop.permute.xlu1 %703  ;;  %v752_v42 = vadd.f32 %v744_v34, %v700_v29 }
 0x17f   : > { %v738_v49 = vmul.f32 %v1640_v12, %v704_v61 }
 0x181   : > { %v746_v44 = vadd.f32 %v738_v49, %v694_v4 }
 0x182   : > { %v712_v14 = vpop.permute.xlu1 %711 }
 0x183   : > { %v740_v41 = vmul.f32 %v1640_v12, %v712_v14  ;;  %762 = vrot.lane.b32.xlu0 %v746_v44, %s1247_s6 }
 0x185   : > { %v748_v58 = vadd.f32 %v740_v41, %v696_v15 }
 0x186   : > { %v716_v23 = vpop.permute.xlu1 %715 }
 0x187   : > { %v741_v13 = vmul.f32 %v1640_v12, %v716_v23  ;;  %766 = vrot.lane.b32.xlu0 %v748_v58, %s1247_s6 }
 0x189   : > { %v749_v32 = vadd.f32 %v741_v13, %v697_v8 }
 0x18a   : > { %v724_v35 = vpop.permute.xlu1 %723 }
 0x18b   : > { %v743_v31 = vmul.f32 %v1640_v12, %v724_v35  ;;  %768 = vrot.lane.b32.xlu1 %v749_v32, %s1247_s6  ;;  %770 = vrot.lane.b32.xlu0 %v750_v22, %s1247_s6 }
 0x18d   : > { %v751_v33 = vadd.f32 %v743_v31, %v699_v37 }
 0x18e   : > { %v732_v6 = vpop.permute.xlu1 %731 }
 0x18f   : > { %v745_v38 = vmul.f32 %v1640_v12, %v732_v6  ;;  %772 = vrot.lane.b32.xlu1 %v751_v33, %s1247_s6  ;;  %774 = vrot.lane.b32.xlu0 %v752_v42, %s1247_s6 }
 0x191   : > { %v753_v40 = vadd.f32 %v745_v38, %v701_v43  ;;  %v1132_v38 = vld [vmem:[%s1374_s11] sm:$0xff] }
 0x193   : > { %776 = vrot.lane.b32.xlu1 %v753_v40, %s1247_s6 }
 0x1e6   : > { %v765_v45 = vpop.permute.xlu1 %764 }
 0x1e7   : > { %v787_v48 = vadd.f32 %v765_v45, %v1644_v17  ;;  %v1133_v45 = vld [vmem:[%s1374_s11 + $0x8] sm:$0xff] }
 0x1e9   : > { %v795_v47 = vsub.f32 0.0, %v787_v48 }
 0x1eb   : > { %v804_v5 = vmul.f32 1.442695, %v795_v47 }
 0x1ed   : > { %1098 = vpow2.f32 %v804_v5  ;;  %v1134_v5 = vld [vmem:[%s1374_s11 + $0x20] sm:$0xff] }
 0x1f5   : > { %v763_v63 = vpop.permute.xlu0 %762 }
 0x1f6   : > { %v786_v36 = vadd.f32 %v763_v63, %v746_v44 }
 0x1f8   : > { %v794_v51 = vsub.f32 0.0, %v786_v36  ;;  %v1135_v36 = vld [vmem:[%s1374_s11 + $0x28] sm:$0xff] }
 0x1f9   : > { %v767_v52 = vpop.permute.xlu0 %766 }
 0x1fa   : > { %v1099_v46 = vpop.eup %1098  ;;  %v802_v54 = vmul.f32 1.442695, %v794_v51  ;;  %v788_v12 = vadd.f32 %v767_v52, %v748_v58 }
 0x1fb   : > { %v819_v57 = vadd.f32 1.0, %v1099_v46 }
 0x1fc   : > { %1100 = vpow2.f32 %v802_v54  ;;  %v796_v0 = vsub.f32 0.0, %v788_v12  ;;  %v1136_v54 = vld [vmem:[%s1374_s11 + $0x30] sm:$0xff] }
 0x1fd   : > { %1102 = vrcp.f32 %v819_v57  ;;  %v769_v59 = vpop.permute.xlu1 %768  ;;  %v771_v60 = vpop.permute.xlu0 %770  ;;  %v1137_v57 = vld [vmem:[%s1374_s11 + $0x38] sm:$0xff] }
 0x1fe   : > { %v806_v61 = vmul.f32 1.442695, %v796_v0  ;;  %v789_v2 = vadd.f32 %v769_v59, %v749_v32  ;;  %v790_v3 = vadd.f32 %v771_v60, %v750_v22  ;;  %v1138_v59 = vld [vmem:[%s1374_s11 + $0x40] sm:$0xff] }
 0x200   : > { %1104 = vpow2.f32 %v806_v61  ;;  %v797_v17 = vsub.f32 0.0, %v789_v2  ;;  %v798_v4 = vsub.f32 0.0, %v790_v3  ;;  %v1139_v61 = vld [vmem:[%s1374_s11 + $0x48] sm:$0xff] }
 0x201   : > { %v773_v49 = vpop.permute.xlu1 %772  ;;  %v775_v39 = vpop.permute.xlu0 %774 }
 0x202   : > { %v808_v7 = vmul.f32 1.442695, %v797_v17  ;;  %v810_v50 = vmul.f32 1.442695, %v798_v4  ;;  %v791_v9 = vadd.f32 %v773_v49, %v751_v33  ;;  %v792_v44 = vadd.f32 %v775_v39, %v752_v42  ;;  %v1131_v42 = vld [vmem:[%s1374_s11 + $0x18] sm:$0xff]  ;;  %v1140_v4 = vld [vmem:[%s1374_s11 + $0x50] sm:$0xff] }
 0x203   : > { %v1141_v39 = vld [vmem:[%s1374_s11 + $0x58] sm:$0xff] }
 0x204   : > { %1106 = vpow2.f32 %v808_v7  ;;  %v799_v10 = vsub.f32 0.0, %v791_v9  ;;  %v800_v11 = vsub.f32 0.0, %v792_v44  ;;  %v1143_v44 = vld [vmem:[%s1374_s11 + $0x68] sm:$0xff] }
 0x205   : > { %1108 = vpow2.f32 %v810_v50  ;;  %v777_v53 = vpop.permute.xlu1 %776  ;;  %v1142_v50 = vld [vmem:[%s1374_s11 + $0x60] sm:$0xff] }
 0x206   : > { %v812_v14 = vmul.f32 1.442695, %v799_v10  ;;  %v814_v30 = vmul.f32 1.442695, %v800_v11  ;;  %v793_v1 = vadd.f32 %v777_v53, %v753_v40  ;;  %v1144_v53 = vld [vmem:[%s1374_s11 + $0x70] sm:$0xff] }
 0x208   : > { %1110 = vpow2.f32 %v812_v14  ;;  %v801_v15 = vsub.f32 0.0, %v793_v1 }
 0x209   : > { %v1101_v41 = vpop.eup %1100  ;;  %1112 = vpow2.f32 %v814_v30  ;;  %v1145_v30 = vld [vmem:[%s1374_s11 + $0x78] sm:$0xff] }
 0x20a   : > { %v1103_v18 = vpop.eup %1102  ;;  %v818_v55 = vadd.f32 1.0, %v1101_v41  ;;  %v816_v19 = vmul.f32 1.442695, %v801_v15 }
 0x20b   : > { %849 = vperm.xlu1 %1097, %v1103_v18  }
 0x20c   : > { %1114 = vrcp.f32 %v818_v55 }
 0x20d   : > { %v1105_v21 = vpop.eup %1104  ;;  %1116 = vpow2.f32 %v816_v19 }
 0x20e   : > { %v820_v58 = vadd.f32 1.0, %v1105_v21 }
 0x210   : > { %1118 = vrcp.f32 %v820_v58 }
 0x211   : > { %v1107_v16 = vpop.eup %1106 }
 0x212   : > { %v1109_v56 = vpop.eup %1108  ;;  %v821_v23 = vadd.f32 1.0, %v1107_v16 }
 0x213   : > { %v822_v26 = vadd.f32 1.0, %v1109_v56 }
 0x214   : > { %1120 = vrcp.f32 %v821_v23 }
 0x215   : > { %v1111_v27 = vpop.eup %1110  ;;  %1122 = vrcp.f32 %v822_v26 }
 0x216   : > { %v1113_v28 = vpop.eup %1112  ;;  %v823_v8 = vadd.f32 1.0, %v1111_v27 }
 0x217   : > { %v824_v13 = vadd.f32 1.0, %v1113_v28 }
 0x218   : > { %1124 = vrcp.f32 %v823_v8 }
 0x219   : > { %v1115_v24 = vpop.eup %1114  ;;  %1126 = vrcp.f32 %v824_v13 }
 0x21a   : > { %v1117_v62 = vpop.eup %1116  ;;  %844 = vperm.xlu0 %1096, %v1115_v24  }
 0x21b   : > { %v825_v29 = vadd.f32 1.0, %v1117_v62 }
 0x21d   : > { %v1119_v32 = vpop.eup %1118  ;;  %1128 = vrcp.f32 %v825_v29 }
 0x21e   : > { %854 = vperm.xlu1 %1097, %v1119_v32  }
 0x221   : > { %v1121_v22 = vpop.eup %1120 }
 0x222   : > { %v1123_v34 = vpop.eup %1122  ;;  %859 = vperm.xlu0 %1096, %v1121_v22  }
 0x223   : > { %864 = vperm.xlu1 %1097, %v1123_v34  }
 0x225   : > { %v1125_v35 = vpop.eup %1124 }
 0x226   : > { %v1127_v25 = vpop.eup %1126  ;;  %869 = vperm.xlu0 %1096, %v1125_v35  }
 0x227   : > { %874 = vperm.xlu1 %1097, %v1127_v25  }
 0x22a   : > { %v1129_v37 = vpop.eup %1128 }
 0x22b   : > { %879 = vperm.xlu0 %1096, %v1129_v37  }
 0x286   : > { %v850_v31 = vpop.permute.xlu1 %849 }
 0x287   : > { %v884_v33 = vmul.f32 %v1130_v20, %v850_v31  ;;  %v885_v6 = vmul.f32 %v1131_v42, %v850_v31 }
 0x289   : > { %900 = vst [vmem:[%s1689_s7 + $0x10] sm:$0xff] %v884_v33  ;;  %901 = vst [vmem:[%s1689_s7 + $0x18] sm:$0xff] %v885_v6 }
 0x295   : > { %v845_v43 = vpop.permute.xlu0 %844 }
 0x296   : > { %v882_v40 = vmul.f32 %v1132_v38, %v845_v43  ;;  %v883_v48 = vmul.f32 %v1133_v45, %v845_v43 }
 0x298   : > { %898 = vst [vmem:[%s1689_s7] sm:$0xff] %v882_v40  ;;  %899 = vst [vmem:[%s1689_s7 + $0x8] sm:$0xff] %v883_v48 }
 0x299   : > { %v855_v47 = vpop.permute.xlu1 %854 }
 0x29a   : > { %v886_v63 = vmul.f32 %v1134_v5, %v855_v47  ;;  %v887_v51 = vmul.f32 %v1135_v36, %v855_v47 }
 0x29c   : > { %902 = vst [vmem:[%s1689_s7 + $0x20] sm:$0xff] %v886_v63  ;;  %903 = vst [vmem:[%s1689_s7 + $0x28] sm:$0xff] %v887_v51 }
 0x29d   : > { %v860_v52 = vpop.permute.xlu0 %859 }
 0x29e   : > { %v865_v46 = vpop.permute.xlu1 %864  ;;  %v888_v12 = vmul.f32 %v1136_v54, %v860_v52  ;;  %v889_v0 = vmul.f32 %v1137_v57, %v860_v52 }
 0x29f   : > { %v890_v60 = vmul.f32 %v1138_v59, %v865_v46  ;;  %v891_v2 = vmul.f32 %v1139_v61, %v865_v46 }
 0x2a0   : > { %904 = vst [vmem:[%s1689_s7 + $0x30] sm:$0xff] %v888_v12  ;;  %905 = vst [vmem:[%s1689_s7 + $0x38] sm:$0xff] %v889_v0 }
 0x2a1   : > { %906 = vst [vmem:[%s1689_s7 + $0x40] sm:$0xff] %v890_v60  ;;  %907 = vst [vmem:[%s1689_s7 + $0x48] sm:$0xff] %v891_v2  ;;  %v870_v3 = vpop.permute.xlu0 %869 }
 0x2a2   : > { %v875_v17 = vpop.permute.xlu1 %874  ;;  %v892_v49 = vmul.f32 %v1140_v4, %v870_v3  ;;  %v893_v7 = vmul.f32 %v1141_v39, %v870_v3 }
 0x2a3   : > { %v894_v9 = vmul.f32 %v1142_v50, %v875_v17  ;;  %v895_v10 = vmul.f32 %v1143_v44, %v875_v17 }
 0x2a4   : > { %908 = vst [vmem:[%s1689_s7 + $0x50] sm:$0xff] %v892_v49  ;;  %909 = vst [vmem:[%s1689_s7 + $0x58] sm:$0xff] %v893_v7 }
 0x2a5   : > { %910 = vst [vmem:[%s1689_s7 + $0x60] sm:$0xff] %v894_v9  ;;  %911 = vst [vmem:[%s1689_s7 + $0x68] sm:$0xff] %v895_v10 }
 0x2a6   : > { %v880_v11 = vpop.permute.xlu0 %879 }
 0x2a7   : > { %v896_v14 = vmul.f32 %v1144_v53, %v880_v11  ;;  %v897_v1 = vmul.f32 %v1145_v30, %v880_v11 }
 0x2a9   : > { %912 = vst [vmem:[%s1689_s7 + $0x70] sm:$0xff] %v896_v14  ;;  %913 = vst [vmem:[%s1689_s7 + $0x78] sm:$0xff] %v897_v1 }
 0x2aa   : > { %1187 = shalt.err (!%p1184_p10)
}
 0x2ab   : > { %s1188_s11 = scalar_lea.hbm %s1722_s20, 2048  ;;  %s1192_s10 = scalar_lea.hbm %s1774_s3, 4096 }
 0x2ac   : > { %p1189_p0 = scmp.ne.s32.totalorder %s1722_s20, %s1188_s11  ;;  %p1193_p1 = scmp.lt.s32.totalorder %s1722_s20, %s1774_s3 }
 0x2ad   : > { %p1194_p3 = scmp.lt.s32.totalorder %s1192_s10, %s1188_s11 }
 0x2ae   : > { %p1190_p2 = pnand %p1189_p0, %p1783_p12 }
 0x2af   : > { %p1195_p6 = por %p1194_p3, %p1193_p1 }
 0x2b0   : > { %p1191_p9 = pneg %p1190_p2 }
 0x2b2   : > { %p1196_p11 = pnand %p1195_p6, %p1191_p9 }
 0x2b4   : > { %1199 = shalt.err (!%p1196_p11)
}
 0x2b5   : > { %s1249_s6 = smov 256   ;;  %s1250_s7 = smov 16  }
 0x2b6   : > { %1019 = dma.vmem_to_hbm [thread:$0]  (%p1783_p12), %s1724_s8, 2048, %s1722_s20, %s915_s16, %s1249_s6, %s1249_s6, %s1250_s7  }
 0x2b7 PF: > { %s943_s9 = sand.u32 1, %s1226_s12   ;;  %p1784_p13 = scmp.ne.s32.totalorder %s1780_s25, 0 }
 0x2b8   : > { %p1785_p4 = scmp.ge.s32.totalorder %s1238_s15, 2  ;;  %s944_s17 = scalar_lea.sflag [#allocation4], %s943_s9 }
 0x2ba   : > { %p1026_p5 = pnand %p1785_p4, %p1784_p13 }
 0x2bc   : > { %p1027_p7 = pneg %p1026_p5 }
 0x2be   : > { %1221 = dma.done.wait (%p1027_p7), %s944_s17, 2048  }
 0x2bf   : > { %1223 = vsyncadd (%p1027_p7), %s944_s17, 4294965248  ;;  %p16_p8 = scmp.ge.s32.totalorder %s1296_s18, 4   ;;  %s1786_s12 = smov %s1230_s13 }
 0x2c0   : > { %s1787_s13 = smov %s1234_s14  ;;  %s1788_s14 = smov %s1308_s21 }
 0x2c1   : > { %s1789_s15 = smov %s1296_s18  ;;  %18 = sbr.rel (!%p16_p8) target bundleno = 5 (0x5), region = 77 }
 0x2c6   :  { %949 = vsyncpa [#allocation3], 1 }
 0x2c7   :  { %951 = vsyncpa [#allocation3 + $0x1], 1 }
 0x2c8   :  { %952 = vsyncpa [#allocation4], 1 }
 0x2c9   :  { %954 = vsyncpa [#allocation4 + $0x1], 1 }

</bundles_post_ra>
